<compile_context>
chip_gen: v7x
topology: tpu7x:2x2x1
jax: 0.10.0
libtpu: 0.0.40
codegen_flags: <defaults>
</compile_context>

<pallas_src>
import jax
import jax.numpy as jnp
from jax.experimental import pallas as pl
from jax.experimental.pallas import tpu as pltpu

_TARGET_TILE_BYTES = 4 << 20   # ~4 MiB per block (f32 compute width)
_MIN_STEPS = 8                 # prefer >= ~4 grid steps per TensorCore (v7x has 2 TCs)


def _logistic_kernel(params_ref, x_ref, o_ref):
    # params_ref: SMEM (3,) float32 -> [a, b, c]
    a = params_ref[0]
    b = params_ref[1]
    c = params_ref[2]
    x = x_ref[...].astype(jnp.float32)
    # exp -> EUP slot; the exact divide's extra VALU ops are free under the HBM
    # roofline and keep the result bit-faithful to the PyTorch reference formula.
    y = c / (1.0 + jnp.exp(-b * (x - a)))
    o_ref[...] = y.astype(o_ref.dtype)


def _pick_row_block(R, C, elem_bytes):
    """Sublane-aligned row-block size: a multiple of 8, or the full extent R."""
    target = max(1, (_TARGET_TILE_BYTES // elem_bytes) // max(C, 1))
    # Keep >= _MIN_STEPS grid steps when the data allows, so the double-buffered
    # pipeline overlaps and the 'parallel' axis can shard over both v7x TCs.
    target = min(target, -(-R // _MIN_STEPS))
    if target >= R:
        return R
    if target < 8:
        return min(8, R)
    return (target // 8) * 8


def _pick_col_block(C, elem_bytes):
    """Lane-aligned column-block size: a multiple of 128, or the full extent C."""
    target = _TARGET_TILE_BYTES // elem_bytes
    if C <= 128 or C <= target:
        return C
    bn = max(128, (target // 128) * 128)
    bn = min(bn, max(128, ((-(-C // _MIN_STEPS)) // 128) * 128))
    return bn


def logistic_growth(x, a, b, c):
    """Elementwise c / (1 + exp(-b * (x - a))) for any input shape / rank."""
    x = jnp.asarray(x)
    orig_shape = x.shape
    out_dtype = x.dtype if jnp.issubdtype(x.dtype, jnp.floating) else jnp.float32

    # Copy-free 2-D view: collapse leading dims; 0-/1-D inputs become one row.
    x2d = x.reshape(-1, x.shape[-1]) if x.ndim >= 2 else x.reshape(1, -1)
    R, C = x2d.shape

    elem_bytes = 4  # size tiles by the f32 compute width even for narrower dtypes

    if R > 1:
        # Row-tiled grid; each block spans the full lane dim (legal whether or not
        # C % 128 == 0).  A partial final row block is masked by Pallas, so ragged
        # shapes need no host-side pad / slice passes over HBM.
        bm = _pick_row_block(R, C, elem_bytes)
        block = (bm, C)
        grid = (pl.cdiv(R, bm),)
        index_map = lambda i: (i, 0)
    else:
        # Single-row (1-D / scalar) input: tile along lanes instead.
        bn = _pick_col_block(C, elem_bytes)
        block = (1, bn)
        grid = (pl.cdiv(C, bn),)
        index_map = lambda i: (0, i)

    params = jnp.array([a, b, c], dtype=jnp.float32)

    out2d = pl.pallas_call(
        _logistic_kernel,
        out_shape=jax.ShapeDtypeStruct((R, C), out_dtype),
        grid=grid,
        in_specs=[
            pl.BlockSpec(memory_space=pltpu.MemorySpace.SMEM),  # scalar params
            pl.BlockSpec(block, index_map),                     # x tile (native dtype)
        ],
        out_specs=pl.BlockSpec(block, index_map),
        compiler_params=pltpu.CompilerParams(
            dimension_semantics=("parallel",),
            # 4 MiB blocks, double-buffered in+out = 16 MiB; 32 MiB gives headroom
            # on v5e (16 MiB scoped default) and stays well under v7x's 64 MiB.
            vmem_limit_bytes=32 << 20,
        ),
    )(params, x2d)

    return out2d.reshape(orig_shape)


if __name__ == "__main__":
    # Parameter values from the module's __init__.
    a, b, c = 20.0, 0.2, 500.0
    key = jax.random.PRNGKey(0)

    def ref_fn(x):
        xf = x.astype(jnp.float32)
        return (c / (1.0 + jnp.exp(-b * (xf - a)))).astype(x.dtype)

    k1, k2, k3 = jax.random.split(key, 3)

    # 16 series x 256 time points in [0, 40): lane-aligned, multi-step row-tiled grid.
    x1 = jax.random.uniform(k1, (16, 256), dtype=jnp.float32) * 40.0
    out1 = jax.block_until_ready(logistic_growth(x1, a, b, c))
    assert out1.shape == x1.shape and out1.dtype == x1.dtype
    assert jnp.allclose(out1, ref_fn(x1), rtol=1e-3, atol=1e-2)

    # Ragged 2-D shape: full-extent lane block + masked partial row block (no pad/slice).
    x2 = jax.random.uniform(k2, (17, 100), dtype=jnp.float32) * 40.0
    out2 = jax.block_until_ready(logistic_growth(x2, a, b, c))
    assert out2.shape == x2.shape
    assert jnp.allclose(out2, ref_fn(x2), rtol=1e-3, atol=1e-2)

    # 1-D time series (the module's natural input): single-row, lane-tiled path.
    x3 = jnp.linspace(0.0, 40.0, 200, dtype=jnp.float32)
    out3 = jax.block_until_ready(logistic_growth(x3, a, b, c))
    assert out3.shape == x3.shape
    assert jnp.allclose(out3, ref_fn(x3), rtol=1e-3, atol=1e-2)

    # bf16 input: kernel I/O stays in native dtype, compute upcasts to f32 inside.
    x4 = (jax.random.uniform(k3, (8, 128), dtype=jnp.float32) * 40.0).astype(jnp.bfloat16)
    out4 = jax.block_until_ready(logistic_growth(x4, a, b, c))
    assert out4.shape == x4.shape and out4.dtype == jnp.bfloat16
    assert jnp.allclose(out4.astype(jnp.float32), ref_fn(x4).astype(jnp.float32),
                        rtol=2e-2, atol=2.0)

    print("KERNEL_OK")
</pallas_src>

<mosaic_0001>
module attributes {stable_mosaic.version = 11 : i64} {
  func.func @_logistic_kernel(%arg0: i32, %arg1: memref<3xf32, #tpu.memory_space<smem>>, %arg2: memref<8x256xf32, #tpu.memory_space<vmem>>, %arg3: memref<8x256xf32, #tpu.memory_space<vmem>>) attributes {dimension_semantics = [#tpu.dimension_semantics<parallel>], iteration_bounds = array<i64: 2>, scalar_prefetch = 0 : i64, scratch_operands = 0 : i64, tpu.core_type = #tpu.core_type<tc>, window_params = [{transform_indices = @transform_0, window_bounds = array<i64: 3>}, {transform_indices = @transform_1, window_bounds = array<i64: 8, 256>}, {transform_indices = @transform_2, window_bounds = array<i64: 8, 256>}]} {
    %c0 = arith.constant 0 : index
    %0 = memref.load %arg1[%c0] : memref<3xf32, #tpu.memory_space<smem>>
    %c1 = arith.constant 1 : index
    %1 = memref.load %arg1[%c1] : memref<3xf32, #tpu.memory_space<smem>>
    %c2 = arith.constant 2 : index
    %2 = memref.load %arg1[%c2] : memref<3xf32, #tpu.memory_space<smem>>
    %c0_0 = arith.constant 0 : index
    %c0_1 = arith.constant 0 : index
    %3 = vector.load %arg2[%c0_0, %c0_1] : memref<8x256xf32, #tpu.memory_space<vmem>>, vector<8x256xf32>
    %cst = arith.constant 0.000000e+00 : f32
    %4 = arith.subf %cst, %1 : f32
    %5 = vector.broadcast %0 : f32 to vector<8x256xf32>
    %6 = arith.subf %3, %5 : vector<8x256xf32>
    %7 = vector.broadcast %4 : f32 to vector<8x256xf32>
    %8 = arith.mulf %7, %6 : vector<8x256xf32>
    %9 = math.exp %8 : vector<8x256xf32>
    %cst_2 = arith.constant 1.000000e+00 : f32
    %10 = vector.broadcast %cst_2 : f32 to vector<8x256xf32>
    %11 = arith.addf %10, %9 : vector<8x256xf32>
    %12 = vector.broadcast %2 : f32 to vector<8x256xf32>
    %13 = arith.divf %12, %11 : vector<8x256xf32>
    %c0_3 = arith.constant 0 : index
    %c0_4 = arith.constant 0 : index
    %14 = vector.load %arg3[%c0_3, %c0_4] : memref<8x256xf32, #tpu.memory_space<vmem>>, vector<8x256xf32>
    tpu.vector_store %arg3[%c0_3, %c0_4], %13 {strides = array<i32>} : memref<8x256xf32, #tpu.memory_space<vmem>>, vector<8x256xf32>,
    return
  }
  func.func @transform_0(%arg0: i32) -> i32 {
    %c0_i32 = arith.constant 0 : i32
    %c0_i32_0 = arith.constant 0 : i32
    return %c0_i32 : i32
  }
  func.func @transform_1(%arg0: i32) -> (i32, i32) {
    %c0_i32 = arith.constant 0 : i32
    %c0_i32_0 = arith.constant 0 : i32
    return %arg0, %c0_i32 : i32, i32
  }
  func.func @transform_2(%arg0: i32) -> (i32, i32) {
    %c0_i32 = arith.constant 0 : i32
    %c0_i32_0 = arith.constant 0 : i32
    return %arg0, %c0_i32 : i32, i32
  }
}

</mosaic_0001>

<bundles_post_ra>
// kernel: tpu_custom_call.1
= control target key start
LH: loop header
LB: loop body
LE: loop exit
PB: predicated region body
PF: predicated region fallthrough
CT: control target
= control target key end

     0   :  { %7 = vsyncpa [#allocation5], 0  ;;  %s717_s0 = inlined_call_operand.hbm [shape: f32[3], index: 0, kind: input, shape index: {}]   ;;  %s718_s1 = inlined_call_operand.hbm [shape: f32[16,256], index: 1, kind: input, shape index: {}]   ;;  %s719_s2 = inlined_call_operand.hbm [shape: f32[16,256], index: 2, kind: output, shape index: {}]  }
   0x1   :  { %8 = vsyncpa [#allocation3], 0 }
   0x2   :  { %10 = vsyncpa [#allocation3 + $0x1], 0 }
   0x3   :  { %11 = vsyncpa [#allocation4], 0 }
   0x4   :  { %13 = vsyncpa [#allocation4 + $0x1], 0  ;;  %s512_s9 = smov 0   ;;  %s514_s10 = smov 0  }
   0x5   :  { %s516_s11 = smov 0   ;;  %s518_s12 = smov 0  }
   0x6 LB: > { %s533_s13 = sadd.s32 4294967295, %s492_s12   ;;  %s294_s14 = sadd.s32 4294967294, %s492_s12   ;;  %s492_s12 = sphi %s518_s12, %s740_s12   ;;  %s488_s11 = sphi %s516_s11, %s739_s11   ;;  %s484_s10 = sphi %s514_s10, %s738_s10   ;;  %s480_s9 = sphi %s512_s9, %s737_s9  }
   0x7   : > { %p60_p0 = scmp.ne.s32.totalorder %s484_s10, %s480_s9  ;;  %p720_p1 = scmp.eq.s32.totalorder %s533_s13, 0 }
   0x8   : > { %p90_p3 = scmp.eq.s32.totalorder %s294_s14, 1  ;;  %p295_p5 = scmp.ge.s32.totalorder %s492_s12, 1 }
   0x9   : > { %p542_p4 = por %p720_p1, %p60_p0  ;;  %p97_p7 = scmp.lt.s32.totalorder %s492_s12, 3 }
   0xa   : > { %p547_p6 = por %p90_p3, %p60_p0  ;;  %s558_s18 = sadd.s32 1, %s492_s12  }
   0xb   : > { %s723_s15 = scalar_select %p542_p4, 1, 0 }
   0xc   : > { %s724_s16 = scalar_select %p547_p6, 1, 0 }
   0xd   : > { %p552_p8 = pnand %p295_p5, %p97_p7  ;;  %s44_s19 = ssub.s32 %s492_s12, %s558_s18 }
   0xe   : > { %s47_s20 = sadd.s32 1, %s488_s11  ;;  %p571_p12 = scmp.eq.s32.totalorder %s44_s19, 0 }
   0xf   : > { %p322_p10 = pneg %p552_p8  ;;  %p54_p13 = scmp.ne.s32.totalorder %s488_s11, %s484_s10 }
  0x10   : > { %p55_p0 = scmp.eq.s32.totalorder %s492_s12, 0  ;;  %p335_p3 = scmp.lt.s32.totalorder %s492_s12, 2 }
  0x11   : > { %p567_p11 = pnand %p322_p10, %p720_p1  ;;  %s379_s25 = scalar_lea.hbm %s717_s0, 16 }
  0x12   : > { %p380_p5 = scmp.ne.s32.totalorder %s717_s0, %s379_s25  ;;  %p386_p1 = scmp.lt.u32.totalorder %s379_s25, %s717_s0 }
  0x13   : > { %p381_p7 = pneg %p567_p11 }
  0x15   : > { %p382_p10 = pnand %p381_p7, %p380_p5 }
  0x17   : > { %p383_p9 = pneg %p382_p10 }
  0x19   : > { %p388_p2 = pnand %p386_p1, %p383_p9 }
  0x1b   : > { %391 = shalt.err (!%p388_p2)
}
  0x1c   : > { %s494_s30 = smov [#allocation2]   ;;  %p56_p1 = por %p55_p0, %p54_p13 }
  0x1d   : > { %325 = dma.hbm_to_smem (!%p567_p11), %s717_s0, 16, %s494_s30, [#allocation5]  }
  0x1e   : > { %s598_s5 = scalar_select %p571_p12, %s488_s11, %s47_s20  }
  0x1f   : > { %p728_p2 = scmp.eq.s32.totalorder %s533_s13, 1  ;;  %s119_s7 = sand.u32 1, %s488_s11  }
  0x20   : > { %s312_s8 = sshll.u32 %s492_s12, 8  ;;  %s298_s14 = sshll.u32 %s119_s7, 4 }
  0x21   : > { %p610_p9 = por %p728_p2, %p54_p13  ;;  %s619_s23 = scalar_lea.hbm %s718_s1, %s312_s8 }
  0x22   : > { %s123_s20 = scalar_lea.vmem [#allocation6], %s298_s14  ;;  %p623_p11 = pnand %p335_p3, %p56_p1 }
  0x23   : > { %s729_s6 = scalar_select %p610_p9, 1, 0 }
  0x24   : > { %s131_s22 = sshll.u32 %s123_s20, 4  ;;  %s120_s25 = scalar_lea.sflag [#allocation3], %s119_s7  ;;  %s627_s22 = int_to_ptr.vmem [resolvable:$true] %s131_s22 }
  0x25   : > { %s392_s26 = scalar_lea.hbm %s619_s23, 256  ;;  %p394_p13 = pneg %p623_p11 }
  0x26   : > { %p393_p12 = scmp.ne.s32.totalorder %s619_s23, %s392_s26  ;;  %s397_s29 = scalar_lea.hbm %s718_s1, 512 }
  0x27   : > { %p398_p3 = scmp.lt.u32.totalorder %s619_s23, %s718_s1  ;;  %p399_p7 = scmp.lt.u32.totalorder %s397_s29, %s392_s26 }
  0x28   : > { %p395_p0 = pnand %p394_p13, %p393_p12  ;;  %p401_p1 = scmp.lt.u32.totalorder %s392_s26, %s619_s23 }
  0x29   : > { %p400_p10 = por %p399_p7, %p398_p3 }
  0x2a   : > { %p396_p5 = pneg %p395_p0 }
  0x2b   : > { %p402_p2 = por %p401_p1, %p400_p10 }
  0x2d   : > { %p403_p6 = pnand %p402_p2, %p396_p5 }
  0x2f   : > { %406 = shalt.err (!%p403_p6)
}
  0x30   : > { %s407_s4 = scalar_lea.vmem %s627_s22, 256  ;;  %s495_s7 = smov [#allocation6]  }
  0x31   : > { %p408_p12 = scmp.ne.s32.totalorder %s627_s22, %s407_s4  ;;  %s412_s8 = sshll.u32 %s495_s7, 4  ;;  %s413_s8 = int_to_ptr.vmem [resolvable:$false] %s412_s8 }
  0x32   : > { %s414_s14 = scalar_lea.vmem %s413_s8, 512  ;;  %p415_p4 = scmp.lt.s32.totalorder %s627_s22, %s413_s8 }
  0x33   : > { %p410_p0 = pnand %p408_p12, %p394_p13  ;;  %p416_p3 = scmp.lt.s32.totalorder %s414_s14, %s407_s4 }
  0x35   : > { %p411_p9 = pneg %p410_p0  ;;  %p417_p7 = por %p416_p3, %p415_p4 }
  0x37   : > { %p418_p10 = pnand %p417_p7, %p411_p9 }
  0x39   : > { %421 = shalt.err (!%p418_p10)
}
  0x3a   : > { %329 = dma.hbm_to_vmem [thread:$0]  (!%p623_p11), %s619_s23, 256, %s627_s22, %s120_s25  }
  0x3b   : > { %140 = sbr.rel (%p552_p8) target bundleno = 127 (0x7f), region = 28  ;;  %p731_p6 = scmp.eq.s32.totalorder (!%p552_p8), %s533_s13, 0 }
  0x42   : > { %467 = dma.done.wait (%p731_p6), [#allocation5], 16   ;;  %p732_p13 = pmov %p731_p6 }
  0x43   : > { %s661_s19 = sand.u32 1, %s484_s10   ;;  %p733_p4 = scmp.ne.s32.totalorder %s723_s15, 0 }
  0x44   : > { %469 = vsyncadd (%p732_p13), [#allocation5], 4294967280  ;;  %s303_s21 = sshll.u32 %s661_s19, 4  ;;  %s147_s20 = scalar_lea.sflag [#allocation3], %s661_s19 }
  0x45   : > { %s150_s24 = scalar_lea.vmem [#allocation6], %s303_s21 }
  0x46   : > { %471 = dma.done.wait (%p733_p4), %s147_s20, 256  }
  0x47   : > { %473 = vsyncadd (%p733_p4), %s147_s20, 4294967040 }
  0x48   : > { %155 = sfence }
  0x49   : > { %s172_s17 = sld [smem:[#allocation2]]  ;;  %s305_s23 = sld [smem:[#allocation2 + $0x1]]  ;;  %v175_v0 = vld [vmem:[%s150_s24] sm:$0xff]  ;;  %v176_v1 = vld [vmem:[%s150_s24 + $0x8] sm:$0xff] }
  0x4a   : > { %s306_s15 = sld [smem:[#allocation2 + $0x2]]  ;;  %s171_s25 = scalar_lea.vmem [#allocation7], %s303_s21 }
  0x4b   : > { %s212_s26 = sshll.u32 %s171_s25, 4  ;;  %s313_s27 = sshll.u32 %s533_s13, 8  ;;  %s670_s26 = int_to_ptr.vmem [resolvable:$true] %s212_s26 }
  0x4c   : > { %s675_s30 = scalar_lea.hbm %s719_s2, %s313_s27  ;;  %s198_s3 = scalar_lea.sflag [#allocation4], %s661_s19 }
  0x4d   : > { %s422_s4 = scalar_lea.vmem %s670_s26, 256  ;;  %p734_p9 = scmp.ne.s32.totalorder %s729_s6, 0 }
  0x4e   : > { %p423_p8 = scmp.ne.s32.totalorder %s670_s26, %s422_s4  ;;  %s496_s13 = smov [#allocation7]  }
  0x4f   : > { %v178_v2 = vstv %s172_s17  ;;  %s177_s22 = ssub.f32 0.0, %s305_s23  ;;  %s426_s7 = sshll.u32 %s496_s13, 4  ;;  %s427_s7 = int_to_ptr.vmem [resolvable:$false] %s426_s7 }
  0x50   : > { %v179_v3 = vsub.f32 %v175_v0, %v178_v2  ;;  %v180_v4 = vsub.f32 %v176_v1, %v178_v2  ;;  %v190_v14 = vstv %s306_s15  ;;  %p424_p11 = pnand %p423_p8, %p734_p9  ;;  %s428_s8 = scalar_lea.vmem %s427_s7, 512 }
  0x51   : > { %v181_v5 = vstv %s177_s22  ;;  %p429_p1 = scmp.lt.s32.totalorder %s670_s26, %s427_s7  ;;  %p430_p2 = scmp.lt.s32.totalorder %s428_s8, %s422_s4 }
  0x52   : > { %v182_v6 = vmul.f32 %v181_v5, %v179_v3  ;;  %v183_v7 = vmul.f32 %v181_v5, %v180_v4  ;;  %p425_p5 = pneg %p424_p11 }
  0x53   : > { %p431_p12 = por %p430_p2, %p429_p1 }
  0x54   : > { %v184_v8 = vmul.f32 1.442695, %v182_v6  ;;  %v186_v9 = vmul.f32 1.442695, %v183_v7 }
  0x55   : > { %p432_p0 = pnand %p431_p12, %p425_p5 }
  0x56   : > { %371 = vpow2.f32 %v184_v8 }
  0x57   : > { %373 = vpow2.f32 %v186_v9 }
  0x60   : > { %v372_v10 = vpop.eup %371 }
  0x61   : > { %v374_v11 = vpop.eup %373  ;;  %v188_v12 = vadd.f32 1.0, %v372_v10 }
  0x62   : > { %v189_v13 = vadd.f32 1.0, %v374_v11 }
  0x63   : > { %375 = vrcp.f32 %v188_v12 }
  0x64   : > { %377 = vrcp.f32 %v189_v13 }
  0x6d   : > { %v376_v15 = vpop.eup %375 }
  0x6e   : > { %v378_v16 = vpop.eup %377  ;;  %v192_v17 = vmul.f32 %v376_v15, %v190_v14 }
  0x6f   : > { %v194_v18 = vmul.f32 %v378_v16, %v190_v14 }
  0x70   : > { %195 = vst [vmem:[%s171_s25] sm:$0xff] %v192_v17 }
  0x71   : > { %196 = vst [vmem:[%s171_s25 + $0x8] sm:$0xff] %v194_v18 }
  0x72   : > { %435 = shalt.err (!%p432_p0)
}
  0x73   : > { %s436_s14 = scalar_lea.hbm %s675_s30, 256  ;;  %s440_s20 = scalar_lea.hbm %s719_s2, 512 }
  0x74   : > { %p437_p3 = scmp.ne.s32.totalorder %s675_s30, %s436_s14  ;;  %p441_p6 = scmp.lt.u32.totalorder %s675_s30, %s719_s2 }
  0x75   : > { %p442_p13 = scmp.lt.u32.totalorder %s440_s20, %s436_s14  ;;  %p444_p8 = scmp.lt.u32.totalorder %s436_s14, %s675_s30 }
  0x76   : > { %p438_p7 = pnand %p437_p3, %p734_p9 }
  0x77   : > { %p443_p4 = por %p442_p13, %p441_p6 }
  0x78   : > { %p439_p10 = pneg %p438_p7 }
  0x79   : > { %p445_p11 = por %p444_p8, %p443_p4 }
  0x7b   : > { %p446_p5 = pnand %p445_p11, %p439_p10 }
  0x7d   : > { %449 = shalt.err (!%p446_p5)
}
  0x7e   : > { %320 = dma.vmem_to_hbm [thread:$0]  (%p734_p9), %s670_s26, 256, %s675_s30, %s198_s3  }
  0x7f PF: > { %s224_s23 = sand.u32 1, %s480_s9   ;;  %p735_p1 = scmp.ne.s32.totalorder %s724_s16, 0 }
  0x80   : > { %p736_p2 = scmp.ge.s32.totalorder %s492_s12, 2  ;;  %s225_s22 = scalar_lea.sflag [#allocation4], %s224_s23 }
  0x82   : > { %p331_p12 = pnand %p736_p2, %p735_p1 }
  0x84   : > { %475 = dma.done.wait (!%p331_p12), %s225_s22, 256  }
  0x85   : > { %477 = vsyncadd (!%p331_p12), %s225_s22, 4294967040  ;;  %p16_p0 = scmp.ge.s32.totalorder %s558_s18, 4   ;;  %s737_s9 = smov %s484_s10 }
  0x86   : > { %s738_s10 = smov %s488_s11  ;;  %s739_s11 = smov %s598_s5 }
  0x87   : > { %s740_s12 = smov %s558_s18  ;;  %18 = sbr.rel (!%p16_p0) target bundleno = 6 (0x6), region = 78 }
  0x8e   :  { %230 = vsyncpa [#allocation3], 1 }
  0x8f   :  { %232 = vsyncpa [#allocation3 + $0x1], 1 }
  0x90   :  { %233 = vsyncpa [#allocation4], 1 }
  0x91   :  { %235 = vsyncpa [#allocation4 + $0x1], 1 }
  0x92   :  { %236 = vsyncpa [#allocation5], 1 }
  0x93   :  { %238 = vsyncpa [#allocation5 + $0x1], 1 }

</bundles_post_ra>
